<compile_context>
chip_gen: v7x
topology: tpu7x:2x2x1
jax: 0.10.0
libtpu: 0.0.40
codegen_flags: <defaults>
</compile_context>

<pallas_src>
import functools

import jax
import jax.numpy as jnp
from jax import lax
from jax.experimental import pallas as pl
from jax.experimental.pallas import tpu as pltpu


def _round_up(x, m):
    return ((x + m - 1) // m) * m


def _vmem_budget():
    """Generation-aware (tile budget, scoped vmem limit) in bytes."""
    try:
        cap = pltpu.get_tpu_info().vmem_capacity_bytes
    except Exception:
        cap = 64 << 20                      # assume smallest (v7x per-TC) if unknown
    if cap >= (128 << 20):                  # v5e / v6e: 128 MiB physical VMEM
        return 32 << 20, 64 << 20
    return 12 << 20, 32 << 20               # v7x: 64 MiB per TensorCore


def _pick_tiles(T, B, N, in_bytes, out_bytes, budget_bytes):
    """(TB, TN, TT): 8-row sublane strip, lane-dense N tile, time chunk sized
    so the double-buffered time-major tiles stay under `budget_bytes`."""
    TB = 8                                   # keeps the (v, c, z) carry tiny (vregs)
    TN = min(_round_up(N, 128), 512)
    # per-timestep VMEM bytes: (current + v_th) in + (zg + z) out, double-buffered
    per_t = 2 * TB * TN * (2 * in_bytes + 2 * out_bytes)
    TT = max(1, budget_bytes // per_t)
    TT = min(TT, T)
    return TB, TN, TT


# ---------------------------------------------------------------------------
# Kernel: one (TB, TN) tile of the (B, N) plane, one TT-chunk of time.
# Grid = (B blocks, N blocks, T blocks); T is the innermost "arbitrary" axis
# and the causal carry (v, c, z) lives in VMEM scratch across t-blocks.
# All arithmetic in f32; per-step work is pure VPU (no MXU — by design).
# ---------------------------------------------------------------------------
def _block_kernel(current_ref, vth_ref, beta_ref, vinit_ref,
                  zg_ref, z_ref, vlast_ref,
                  v_sc, c_sc, z_sc, *, t_total):
    TT = current_ref.shape[0]
    t_blk = pl.program_id(2)

    @pl.when(t_blk == 0)
    def _init():
        v_sc[...] = vinit_ref[...].astype(jnp.float32)
        c_sc[...] = jnp.zeros_like(c_sc)
        z_sc[...] = jnp.zeros_like(z_sc)

    # (1, TN) row; implicit sublane broadcast in `beta_row * v` (no materialize).
    beta_row = beta_ref[...].astype(jnp.float32)

    has_tail = (t_total % TT) != 0           # static (trace-time) flag
    t_base = t_blk * TT

    def step(t, carry):
        v, c, z = carry
        # membrane[t] = beta * membrane[t-1] + current[t]
        v_new = beta_row * v + current_ref[t].astype(jnp.float32)
        # surr_grad forward: Heaviside(membrane - v_th), strict >
        spike = (v_new - vth_ref[t].astype(jnp.float32) > 0.0).astype(jnp.float32)
        c_new = c + spike                     # running spike count (cumsum)
        z_new = z + c_new                     # == conv2d with phi kernel
        z_ref[t] = z_new.astype(z_ref.dtype)
        zg_ref[t] = (z_new == 1.0).astype(zg_ref.dtype)   # Block.g, in-loop
        if has_tail:
            # Padded tail timesteps must not corrupt the carry (v_last!).
            valid = (t_base + t) < t_total
            v_new = jnp.where(valid, v_new, v)
            c_new = jnp.where(valid, c_new, c)
            z_new = jnp.where(valid, z_new, z)
        return v_new, c_new, z_new

    v, c, z = lax.fori_loop(0, TT, step,
                            (v_sc[...], c_sc[...], z_sc[...]),
                            unroll=min(8, TT))
    v_sc[...] = v
    c_sc[...] = c
    z_sc[...] = z
    # v_last output block is resident across the t axis; the last t-block's
    # value is what gets written back to HBM.
    vlast_ref[...] = v.astype(vlast_ref.dtype)


def block_forward(current, v_th, beta, v_init=None, *, t_len=None,
                  max_t_chunk=None):
    """current, v_th: (T, B, N); beta: (N,); v_init: (B, N) or None."""
    T, B, N = current.shape
    if t_len is not None:
        assert T == t_len, "Block assumes the time dimension equals t_len"
    if v_init is None:
        v_init = jnp.zeros((B, N), current.dtype)

    out_dtype = current.dtype                 # 0/1 mask & small exact ints
    budget, vmem_limit = _vmem_budget()
    in_bytes = jnp.dtype(current.dtype).itemsize
    out_bytes = jnp.dtype(out_dtype).itemsize
    TB, TN, TT = _pick_tiles(T, B, N, in_bytes, out_bytes, budget)
    if max_t_chunk is not None:
        TT = max(1, min(TT, max_t_chunk))

    beta2 = beta.reshape(1, N)
    grid = (pl.cdiv(B, TB), pl.cdiv(N, TN), pl.cdiv(T, TT))

    out_shape = (
        jax.ShapeDtypeStruct((T, B, N), out_dtype),     # g(z)
        jax.ShapeDtypeStruct((T, B, N), out_dtype),     # z_copy
        jax.ShapeDtypeStruct((B, N), jnp.float32),      # membrane[:, :, -1]
    )

    kernel = functools.partial(_block_kernel, t_total=T)

    zg, z, v_last = pl.pallas_call(
        kernel,
        out_shape=out_shape,
        grid=grid,
        in_specs=[
            pl.BlockSpec((TT, TB, TN), lambda b, n, t: (t, b, n)),   # current
            pl.BlockSpec((TT, TB, TN), lambda b, n, t: (t, b, n)),   # v_th
            pl.BlockSpec((1, TN), lambda b, n, t: (0, n)),           # beta
            pl.BlockSpec((TB, TN), lambda b, n, t: (b, n)),          # v_init
        ],
        out_specs=(
            pl.BlockSpec((TT, TB, TN), lambda b, n, t: (t, b, n)),   # g(z)
            pl.BlockSpec((TT, TB, TN), lambda b, n, t: (t, b, n)),   # z
            pl.BlockSpec((TB, TN), lambda b, n, t: (b, n)),          # v_last
        ),
        scratch_shapes=[
            pltpu.VMEM((TB, TN), jnp.float32),   # v carry
            pltpu.VMEM((TB, TN), jnp.float32),   # c carry (spike cumsum)
            pltpu.VMEM((TB, TN), jnp.float32),   # z carry
        ],
        compiler_params=pltpu.CompilerParams(
            dimension_semantics=("parallel", "parallel", "arbitrary"),
            vmem_limit_bytes=vmem_limit,
        ),
    )(current, v_th, beta2, v_init)

    return zg, z, v_last


# ---------------------------------------------------------------------------
# Pure-JAX reference mirroring the PyTorch convolutions, for validation.
# ---------------------------------------------------------------------------
def block_forward_ref(current, v_th, beta, v_init=None):
    T, B, N = current.shape
    cur = jnp.transpose(current, (1, 2, 0)).astype(jnp.float32)   # (B, N, T)
    vth = jnp.transpose(v_th, (1, 2, 0)).astype(jnp.float32)
    if v_init is not None:
        cur = cur.at[:, :, 0].add(beta * v_init)

    t_idx = jnp.arange(T)
    diff = t_idx[:, None] - t_idx[None, :]                        # t - s
    causal = diff >= 0
    # grouped conv1d: membrane[b,n,t] = sum_{s<=t} cur[b,n,s] * beta[n]^(t-s)
    beta_pow = jnp.where(causal[None], beta[:, None, None] **
                         jnp.maximum(diff, 0)[None].astype(jnp.float32), 0.0)
    membrane = jnp.einsum('bns,nts->bnt', cur, beta_pow)
    spikes = (membrane - vth > 0.0).astype(jnp.float32)
    # conv2d with phi kernel: z[b,n,t] = sum_{s<=t} spikes[b,n,s] * (t-s+1)
    phi = jnp.where(causal, (diff + 1).astype(jnp.float32), 0.0)
    z = jnp.einsum('bns,ts->bnt', spikes, phi)
    z = jnp.transpose(z, (2, 0, 1))                               # (T, B, N)
    zg = jnp.where(z == 1.0, 1.0, 0.0)
    return zg, z, membrane[:, :, -1]


if __name__ == "__main__":
    T_LEN = 8   # t_len (== time dimension of the input)
    B = 2       # batch
    N = 32      # n_in

    key = jax.random.PRNGKey(0)
    k1, k2, k3, k4 = jax.random.split(key, 4)
    current = jax.random.normal(k1, (T_LEN, B, N), jnp.float32)
    v_th = jnp.full((T_LEN, B, N), 1.0, jnp.float32)
    beta = jax.random.uniform(k3, (N,), jnp.float32, 0.3, 0.95)
    v_init = jax.random.normal(k4, (B, N), jnp.float32) * 0.1

    zg_r, z_r, v_last_r = block_forward_ref(current, v_th, beta, v_init)

    # Single-t-block path (full T resident in one chunk).
    zg, z, v_last = jax.block_until_ready(
        block_forward(current, v_th, beta, v_init, t_len=T_LEN))
    assert jnp.allclose(v_last, v_last_r, atol=1e-4), "membrane mismatch"
    assert jnp.array_equal(z, z_r), "z mismatch"
    assert jnp.array_equal(zg, zg_r), "g(z) mismatch"

    # Streamed-T path with a non-dividing chunk (exercises tail masking).
    zg2, z2, v_last2 = jax.block_until_ready(
        block_forward(current, v_th, beta, v_init, t_len=T_LEN, max_t_chunk=3))
    assert jnp.allclose(v_last2, v_last_r, atol=1e-4), "membrane mismatch (chunked)"
    assert jnp.array_equal(z2, z_r), "z mismatch (chunked)"
    assert jnp.array_equal(zg2, zg_r), "g(z) mismatch (chunked)"

    print("KERNEL_OK")
</pallas_src>

<mosaic_0001>
module attributes {stable_mosaic.version = 11 : i64} {
  func.func @_block_kernel(%arg0: i32, %arg1: i32, %arg2: i32, %arg3: memref<8x8x128xf32, #tpu.memory_space<vmem>>, %arg4: memref<8x8x128xf32, #tpu.memory_space<vmem>>, %arg5: memref<1x128xf32, #tpu.memory_space<vmem>>, %arg6: memref<8x128xf32, #tpu.memory_space<vmem>>, %arg7: memref<8x8x128xf32, #tpu.memory_space<vmem>>, %arg8: memref<8x8x128xf32, #tpu.memory_space<vmem>>, %arg9: memref<8x128xf32, #tpu.memory_space<vmem>>, %arg10: memref<8x128xf32, #tpu.memory_space<vmem>>, %arg11: memref<8x128xf32, #tpu.memory_space<vmem>>, %arg12: memref<8x128xf32, #tpu.memory_space<vmem>>) attributes {dimension_semantics = [#tpu.dimension_semantics<parallel>, #tpu.dimension_semantics<parallel>, #tpu.dimension_semantics<arbitrary>], iteration_bounds = array<i64: 1, 1, 1>, scalar_prefetch = 0 : i64, scratch_operands = 3 : i64, tpu.core_type = #tpu.core_type<tc>, window_params = [{transform_indices = @transform_0, window_bounds = array<i64: 8, 8, 128>}, {transform_indices = @transform_1, window_bounds = array<i64: 8, 8, 128>}, {transform_indices = @transform_2, window_bounds = array<i64: 1, 128>}, {transform_indices = @transform_3, window_bounds = array<i64: 8, 128>}, {transform_indices = @transform_4, window_bounds = array<i64: 8, 8, 128>}, {transform_indices = @transform_5, window_bounds = array<i64: 8, 8, 128>}, {transform_indices = @transform_6, window_bounds = array<i64: 8, 128>}]} {
    %c0_i32 = arith.constant 0 : i32
    %0 = arith.cmpi eq, %arg2, %c0_i32 : i32
    %1 = arith.extui %0 : i1 to i32
    %c0_i32_0 = arith.constant 0 : i32
    %2 = arith.cmpi ne, %1, %c0_i32_0 : i32
    scf.if %2 {
      %c0_96 = arith.constant 0 : index
      %c0_97 = arith.constant 0 : index
      %235 = vector.load %arg6[%c0_96, %c0_97] : memref<8x128xf32, #tpu.memory_space<vmem>>, vector<8x128xf32>
      %c0_98 = arith.constant 0 : index
      %c0_99 = arith.constant 0 : index
      %236 = vector.load %arg10[%c0_98, %c0_99] : memref<8x128xf32, #tpu.memory_space<vmem>>, vector<8x128xf32>
      tpu.vector_store %arg10[%c0_98, %c0_99], %235 {strides = array<i32>} : memref<8x128xf32, #tpu.memory_space<vmem>>, vector<8x128xf32>,
      %cst_100 = arith.constant 0.000000e+00 : f32
      %237 = vector.broadcast %cst_100 : f32 to vector<8x128xf32>
      %c0_101 = arith.constant 0 : index
      %c0_102 = arith.constant 0 : index
      %238 = vector.load %arg11[%c0_101, %c0_102] : memref<8x128xf32, #tpu.memory_space<vmem>>, vector<8x128xf32>
      tpu.vector_store %arg11[%c0_101, %c0_102], %237 {strides = array<i32>} : memref<8x128xf32, #tpu.memory_space<vmem>>, vector<8x128xf32>,
      %cst_103 = arith.constant 0.000000e+00 : f32
      %239 = vector.broadcast %cst_103 : f32 to vector<8x128xf32>
      %c0_104 = arith.constant 0 : index
      %c0_105 = arith.constant 0 : index
      %240 = vector.load %arg12[%c0_104, %c0_105] : memref<8x128xf32, #tpu.memory_space<vmem>>, vector<8x128xf32>
      tpu.vector_store %arg12[%c0_104, %c0_105], %239 {strides = array<i32>} : memref<8x128xf32, #tpu.memory_space<vmem>>, vector<8x128xf32>,
    } else {
    }
    %c0 = arith.constant 0 : index
    %c0_1 = arith.constant 0 : index
    %3 = vector.load %arg5[%c0, %c0_1] : memref<1x128xf32, #tpu.memory_space<vmem>>, vector<1x128xf32>
    %c0_2 = arith.constant 0 : index
    %c0_3 = arith.constant 0 : index
    %4 = vector.load %arg10[%c0_2, %c0_3] : memref<8x128xf32, #tpu.memory_space<vmem>>, vector<8x128xf32>
    %c0_4 = arith.constant 0 : index
    %c0_5 = arith.constant 0 : index
    %5 = vector.load %arg11[%c0_4, %c0_5] : memref<8x128xf32, #tpu.memory_space<vmem>>, vector<8x128xf32>
    %c0_6 = arith.constant 0 : index
    %c0_7 = arith.constant 0 : index
    %6 = vector.load %arg12[%c0_6, %c0_7] : memref<8x128xf32, #tpu.memory_space<vmem>>, vector<8x128xf32>
    %c0_i32_8 = arith.constant 0 : i32
    %7 = vector.broadcast %3 : vector<1x128xf32> to vector<8x128xf32>
    %8 = arith.mulf %7, %4 : vector<8x128xf32>
    %9 = arith.index_cast %c0_i32_8 : i32 to index
    %c0_9 = arith.constant 0 : index
    %c0_10 = arith.constant 0 : index
    %10 = vector.load %arg3[%9, %c0_9, %c0_10] : memref<8x8x128xf32, #tpu.memory_space<vmem>>, vector<1x8x128xf32>
    %11 = vector.shape_cast %10 : vector<1x8x128xf32> to vector<8x128xf32>
    %12 = arith.addf %8, %11 : vector<8x128xf32>
    %13 = arith.index_cast %c0_i32_8 : i32 to index
    %c0_11 = arith.constant 0 : index
    %c0_12 = arith.constant 0 : index
    %14 = vector.load %arg4[%13, %c0_11, %c0_12] : memref<8x8x128xf32, #tpu.memory_space<vmem>>, vector<1x8x128xf32>
    %15 = vector.shape_cast %14 : vector<1x8x128xf32> to vector<8x128xf32>
    %16 = arith.subf %12, %15 : vector<8x128xf32>
    %cst = arith.constant 0.000000e+00 : f32
    %17 = vector.broadcast %cst : f32 to vector<8x128xf32>
    %18 = arith.cmpf ogt, %16, %17 : vector<8x128xf32>
    %19 = arith.extui %18 : vector<8x128xi1> to vector<8x128xi32>
    %20 = arith.sitofp %19 : vector<8x128xi32> to vector<8x128xf32>
    %21 = arith.addf %5, %20 : vector<8x128xf32>
    %22 = arith.addf %6, %21 : vector<8x128xf32>
    %23 = arith.index_cast %c0_i32_8 : i32 to index
    %c0_13 = arith.constant 0 : index
    %c0_14 = arith.constant 0 : index
    %24 = vector.load %arg8[%23, %c0_13, %c0_14] : memref<8x8x128xf32, #tpu.memory_space<vmem>>, vector<1x8x128xf32>
    %25 = vector.shape_cast %24 : vector<1x8x128xf32> to vector<8x128xf32>
    %26 = vector.shape_cast %22 : vector<8x128xf32> to vector<1x8x128xf32>
    tpu.vector_store %arg8[%23, %c0_13, %c0_14], %26 {strides = array<i32>} : memref<8x8x128xf32, #tpu.memory_space<vmem>>, vector<1x8x128xf32>,
    %cst_15 = arith.constant 1.000000e+00 : f32
    %27 = vector.broadcast %cst_15 : f32 to vector<8x128xf32>
    %28 = arith.cmpf oeq, %22, %27 : vector<8x128xf32>
    %29 = arith.extui %28 : vector<8x128xi1> to vector<8x128xi32>
    %30 = arith.sitofp %29 : vector<8x128xi32> to vector<8x128xf32>
    %31 = arith.index_cast %c0_i32_8 : i32 to index
    %c0_16 = arith.constant 0 : index
    %c0_17 = arith.constant 0 : index
    %32 = vector.load %arg7[%31, %c0_16, %c0_17] : memref<8x8x128xf32, #tpu.memory_space<vmem>>, vector<1x8x128xf32>
    %33 = vector.shape_cast %32 : vector<1x8x128xf32> to vector<8x128xf32>
    %34 = vector.shape_cast %30 : vector<8x128xf32> to vector<1x8x128xf32>
    tpu.vector_store %arg7[%31, %c0_16, %c0_17], %34 {strides = array<i32>} : memref<8x8x128xf32, #tpu.memory_space<vmem>>, vector<1x8x128xf32>,
    %c1_i32 = arith.constant 1 : i32
    %35 = vector.broadcast %3 : vector<1x128xf32> to vector<8x128xf32>
    %36 = arith.mulf %35, %12 : vector<8x128xf32>
    %37 = arith.index_cast %c1_i32 : i32 to index
    %c0_18 = arith.constant 0 : index
    %c0_19 = arith.constant 0 : index
    %38 = vector.load %arg3[%37, %c0_18, %c0_19] : memref<8x8x128xf32, #tpu.memory_space<vmem>>, vector<1x8x128xf32>
    %39 = vector.shape_cast %38 : vector<1x8x128xf32> to vector<8x128xf32>
    %40 = arith.addf %36, %39 : vector<8x128xf32>
    %41 = arith.index_cast %c1_i32 : i32 to index
    %c0_20 = arith.constant 0 : index
    %c0_21 = arith.constant 0 : index
    %42 = vector.load %arg4[%41, %c0_20, %c0_21] : memref<8x8x128xf32, #tpu.memory_space<vmem>>, vector<1x8x128xf32>
    %43 = vector.shape_cast %42 : vector<1x8x128xf32> to vector<8x128xf32>
    %44 = arith.subf %40, %43 : vector<8x128xf32>
    %cst_22 = arith.constant 0.000000e+00 : f32
    %45 = vector.broadcast %cst_22 : f32 to vector<8x128xf32>
    %46 = arith.cmpf ogt, %44, %45 : vector<8x128xf32>
    %47 = arith.extui %46 : vector<8x128xi1> to vector<8x128xi32>
    %48 = arith.sitofp %47 : vector<8x128xi32> to vector<8x128xf32>
    %49 = arith.addf %21, %48 : vector<8x128xf32>
    %50 = arith.addf %22, %49 : vector<8x128xf32>
    %51 = arith.index_cast %c1_i32 : i32 to index
    %c0_23 = arith.constant 0 : index
    %c0_24 = arith.constant 0 : index
    %52 = vector.load %arg8[%51, %c0_23, %c0_24] : memref<8x8x128xf32, #tpu.memory_space<vmem>>, vector<1x8x128xf32>
    %53 = vector.shape_cast %52 : vector<1x8x128xf32> to vector<8x128xf32>
    %54 = vector.shape_cast %50 : vector<8x128xf32> to vector<1x8x128xf32>
    tpu.vector_store %arg8[%51, %c0_23, %c0_24], %54 {strides = array<i32>} : memref<8x8x128xf32, #tpu.memory_space<vmem>>, vector<1x8x128xf32>,
    %cst_25 = arith.constant 1.000000e+00 : f32
    %55 = vector.broadcast %cst_25 : f32 to vector<8x128xf32>
    %56 = arith.cmpf oeq, %50, %55 : vector<8x128xf32>
    %57 = arith.extui %56 : vector<8x128xi1> to vector<8x128xi32>
    %58 = arith.sitofp %57 : vector<8x128xi32> to vector<8x128xf32>
    %59 = arith.index_cast %c1_i32 : i32 to index
    %c0_26 = arith.constant 0 : index
    %c0_27 = arith.constant 0 : index
    %60 = vector.load %arg7[%59, %c0_26, %c0_27] : memref<8x8x128xf32, #tpu.memory_space<vmem>>, vector<1x8x128xf32>
    %61 = vector.shape_cast %60 : vector<1x8x128xf32> to vector<8x128xf32>
    %62 = vector.shape_cast %58 : vector<8x128xf32> to vector<1x8x128xf32>
    tpu.vector_store %arg7[%59, %c0_26, %c0_27], %62 {strides = array<i32>} : memref<8x8x128xf32, #tpu.memory_space<vmem>>, vector<1x8x128xf32>,
    %c2_i32 = arith.constant 2 : i32
    %63 = vector.broadcast %3 : vector<1x128xf32> to vector<8x128xf32>
    %64 = arith.mulf %63, %40 : vector<8x128xf32>
    %65 = arith.index_cast %c2_i32 : i32 to index
    %c0_28 = arith.constant 0 : index
    %c0_29 = arith.constant 0 : index
    %66 = vector.load %arg3[%65, %c0_28, %c0_29] : memref<8x8x128xf32, #tpu.memory_space<vmem>>, vector<1x8x128xf32>
    %67 = vector.shape_cast %66 : vector<1x8x128xf32> to vector<8x128xf32>
    %68 = arith.addf %64, %67 : vector<8x128xf32>
    %69 = arith.index_cast %c2_i32 : i32 to index
    %c0_30 = arith.constant 0 : index
    %c0_31 = arith.constant 0 : index
    %70 = vector.load %arg4[%69, %c0_30, %c0_31] : memref<8x8x128xf32, #tpu.memory_space<vmem>>, vector<1x8x128xf32>
    %71 = vector.shape_cast %70 : vector<1x8x128xf32> to vector<8x128xf32>
    %72 = arith.subf %68, %71 : vector<8x128xf32>
    %cst_32 = arith.constant 0.000000e+00 : f32
    %73 = vector.broadcast %cst_32 : f32 to vector<8x128xf32>
    %74 = arith.cmpf ogt, %72, %73 : vector<8x128xf32>
    %75 = arith.extui %74 : vector<8x128xi1> to vector<8x128xi32>
    %76 = arith.sitofp %75 : vector<8x128xi32> to vector<8x128xf32>
    %77 = arith.addf %49, %76 : vector<8x128xf32>
    %78 = arith.addf %50, %77 : vector<8x128xf32>
    %79 = arith.index_cast %c2_i32 : i32 to index
    %c0_33 = arith.constant 0 : index
    %c0_34 = arith.constant 0 : index
    %80 = vector.load %arg8[%79, %c0_33, %c0_34] : memref<8x8x128xf32, #tpu.memory_space<vmem>>, vector<1x8x128xf32>
    %81 = vector.shape_cast %80 : vector<1x8x128xf32> to vector<8x128xf32>
    %82 = vector.shape_cast %78 : vector<8x128xf32> to vector<1x8x128xf32>
    tpu.vector_store %arg8[%79, %c0_33, %c0_34], %82 {strides = array<i32>} : memref<8x8x128xf32, #tpu.memory_space<vmem>>, vector<1x8x128xf32>,
    %cst_35 = arith.constant 1.000000e+00 : f32
    %83 = vector.broadcast %cst_35 : f32 to vector<8x128xf32>
    %84 = arith.cmpf oeq, %78, %83 : vector<8x128xf32>
    %85 = arith.extui %84 : vector<8x128xi1> to vector<8x128xi32>
    %86 = arith.sitofp %85 : vector<8x128xi32> to vector<8x128xf32>
    %87 = arith.index_cast %c2_i32 : i32 to index
    %c0_36 = arith.constant 0 : index
    %c0_37 = arith.constant 0 : index
    %88 = vector.load %arg7[%87, %c0_36, %c0_37] : memref<8x8x128xf32, #tpu.memory_space<vmem>>, vector<1x8x128xf32>
    %89 = vector.shape_cast %88 : vector<1x8x128xf32> to vector<8x128xf32>
    %90 = vector.shape_cast %86 : vector<8x128xf32> to vector<1x8x128xf32>
    tpu.vector_store %arg7[%87, %c0_36, %c0_37], %90 {strides = array<i32>} : memref<8x8x128xf32, #tpu.memory_space<vmem>>, vector<1x8x128xf32>,
    %c3_i32 = arith.constant 3 : i32
    %91 = vector.broadcast %3 : vector<1x128xf32> to vector<8x128xf32>
    %92 = arith.mulf %91, %68 : vector<8x128xf32>
    %93 = arith.index_cast %c3_i32 : i32 to index
    %c0_38 = arith.constant 0 : index
    %c0_39 = arith.constant 0 : index
    %94 = vector.load %arg3[%93, %c0_38, %c0_39] : memref<8x8x128xf32, #tpu.memory_space<vmem>>, vector<1x8x128xf32>
    %95 = vector.shape_cast %94 : vector<1x8x128xf32> to vector<8x128xf32>
    %96 = arith.addf %92, %95 : vector<8x128xf32>
    %97 = arith.index_cast %c3_i32 : i32 to index
    %c0_40 = arith.constant 0 : index
    %c0_41 = arith.constant 0 : index
    %98 = vector.load %arg4[%97, %c0_40, %c0_41] : memref<8x8x128xf32, #tpu.memory_space<vmem>>, vector<1x8x128xf32>
    %99 = vector.shape_cast %98 : vector<1x8x128xf32> to vector<8x128xf32>
    %100 = arith.subf %96, %99 : vector<8x128xf32>
    %cst_42 = arith.constant 0.000000e+00 : f32
    %101 = vector.broadcast %cst_42 : f32 to vector<8x128xf32>
    %102 = arith.cmpf ogt, %100, %101 : vector<8x128xf32>
    %103 = arith.extui %102 : vector<8x128xi1> to vector<8x128xi32>
    %104 = arith.sitofp %103 : vector<8x128xi32> to vector<8x128xf32>
    %105 = arith.addf %77, %104 : vector<8x128xf32>
    %106 = arith.addf %78, %105 : vector<8x128xf32>
    %107 = arith.index_cast %c3_i32 : i32 to index
    %c0_43 = arith.constant 0 : index
    %c0_44 = arith.constant 0 : index
    %108 = vector.load %arg8[%107, %c0_43, %c0_44] : memref<8x8x128xf32, #tpu.memory_space<vmem>>, vector<1x8x128xf32>
    %109 = vector.shape_cast %108 : vector<1x8x128xf32> to vector<8x128xf32>
    %110 = vector.shape_cast %106 : vector<8x128xf32> to vector<1x8x128xf32>
    tpu.vector_store %arg8[%107, %c0_43, %c0_44], %110 {strides = array<i32>} : memref<8x8x128xf32, #tpu.memory_space<vmem>>, vector<1x8x128xf32>,
    %cst_45 = arith.constant 1.000000e+00 : f32
    %111 = vector.broadcast %cst_45 : f32 to vector<8x128xf32>
    %112 = arith.cmpf oeq, %106, %111 : vector<8x128xf32>
    %113 = arith.extui %112 : vector<8x128xi1> to vector<8x128xi32>
    %114 = arith.sitofp %113 : vector<8x128xi32> to vector<8x128xf32>
    %115 = arith.index_cast %c3_i32 : i32 to index
    %c0_46 = arith.constant 0 : index
    %c0_47 = arith.constant 0 : index
    %116 = vector.load %arg7[%115, %c0_46, %c0_47] : memref<8x8x128xf32, #tpu.memory_space<vmem>>, vector<1x8x128xf32>
    %117 = vector.shape_cast %116 : vector<1x8x128xf32> to vector<8x128xf32>
    %118 = vector.shape_cast %114 : vector<8x128xf32> to vector<1x8x128xf32>
    tpu.vector_store %arg7[%115, %c0_46, %c0_47], %118 {strides = array<i32>} : memref<8x8x128xf32, #tpu.memory_space<vmem>>, vector<1x8x128xf32>,
    %c4_i32 = arith.constant 4 : i32
    %119 = vector.broadcast %3 : vector<1x128xf32> to vector<8x128xf32>
    %120 = arith.mulf %119, %96 : vector<8x128xf32>
    %121 = arith.index_cast %c4_i32 : i32 to index
    %c0_48 = arith.constant 0 : index
    %c0_49 = arith.constant 0 : index
    %122 = vector.load %arg3[%121, %c0_48, %c0_49] : memref<8x8x128xf32, #tpu.memory_space<vmem>>, vector<1x8x128xf32>
    %123 = vector.shape_cast %122 : vector<1x8x128xf32> to vector<8x128xf32>
    %124 = arith.addf %120, %123 : vector<8x128xf32>
    %125 = arith.index_cast %c4_i32 : i32 to index
    %c0_50 = arith.constant 0 : index
    %c0_51 = arith.constant 0 : index
    %126 = vector.load %arg4[%125, %c0_50, %c0_51] : memref<8x8x128xf32, #tpu.memory_space<vmem>>, vector<1x8x128xf32>
    %127 = vector.shape_cast %126 : vector<1x8x128xf32> to vector<8x128xf32>
    %128 = arith.subf %124, %127 : vector<8x128xf32>
    %cst_52 = arith.constant 0.000000e+00 : f32
    %129 = vector.broadcast %cst_52 : f32 to vector<8x128xf32>
    %130 = arith.cmpf ogt, %128, %129 : vector<8x128xf32>
    %131 = arith.extui %130 : vector<8x128xi1> to vector<8x128xi32>
    %132 = arith.sitofp %131 : vector<8x128xi32> to vector<8x128xf32>
    %133 = arith.addf %105, %132 : vector<8x128xf32>
    %134 = arith.addf %106, %133 : vector<8x128xf32>
    %135 = arith.index_cast %c4_i32 : i32 to index
    %c0_53 = arith.constant 0 : index
    %c0_54 = arith.constant 0 : index
    %136 = vector.load %arg8[%135, %c0_53, %c0_54] : memref<8x8x128xf32, #tpu.memory_space<vmem>>, vector<1x8x128xf32>
    %137 = vector.shape_cast %136 : vector<1x8x128xf32> to vector<8x128xf32>
    %138 = vector.shape_cast %134 : vector<8x128xf32> to vector<1x8x128xf32>
    tpu.vector_store %arg8[%135, %c0_53, %c0_54], %138 {strides = array<i32>} : memref<8x8x128xf32, #tpu.memory_space<vmem>>, vector<1x8x128xf32>,
    %cst_55 = arith.constant 1.000000e+00 : f32
    %139 = vector.broadcast %cst_55 : f32 to vector<8x128xf32>
    %140 = arith.cmpf oeq, %134, %139 : vector<8x128xf32>
    %141 = arith.extui %140 : vector<8x128xi1> to vector<8x128xi32>
    %142 = arith.sitofp %141 : vector<8x128xi32> to vector<8x128xf32>
    %143 = arith.index_cast %c4_i32 : i32 to index
    %c0_56 = arith.constant 0 : index
    %c0_57 = arith.constant 0 : index
    %144 = vector.load %arg7[%143, %c0_56, %c0_57] : memref<8x8x128xf32, #tpu.memory_space<vmem>>, vector<1x8x128xf32>
    %145 = vector.shape_cast %144 : vector<1x8x128xf32> to vector<8x128xf32>
    %146 = vector.shape_cast %142 : vector<8x128xf32> to vector<1x8x128xf32>
    tpu.vector_store %arg7[%143, %c0_56, %c0_57], %146 {strides = array<i32>} : memref<8x8x128xf32, #tpu.memory_space<vmem>>, vector<1x8x128xf32>,
    %c5_i32 = arith.constant 5 : i32
    %147 = vector.broadcast %3 : vector<1x128xf32> to vector<8x128xf32>
    %148 = arith.mulf %147, %124 : vector<8x128xf32>
    %149 = arith.index_cast %c5_i32 : i32 to index
    %c0_58 = arith.constant 0 : index
    %c0_59 = arith.constant 0 : index
    %150 = vector.load %arg3[%149, %c0_58, %c0_59] : memref<8x8x128xf32, #tpu.memory_space<vmem>>, vector<1x8x128xf32>
    %151 = vector.shape_cast %150 : vector<1x8x128xf32> to vector<8x128xf32>
    %152 = arith.addf %148, %151 : vector<8x128xf32>
    %153 = arith.index_cast %c5_i32 : i32 to index
    %c0_60 = arith.constant 0 : index
    %c0_61 = arith.constant 0 : index
    %154 = vector.load %arg4[%153, %c0_60, %c0_61] : memref<8x8x128xf32, #tpu.memory_space<vmem>>, vector<1x8x128xf32>
    %155 = vector.shape_cast %154 : vector<1x8x128xf32> to vector<8x128xf32>
    %156 = arith.subf %152, %155 : vector<8x128xf32>
    %cst_62 = arith.constant 0.000000e+00 : f32
    %157 = vector.broadcast %cst_62 : f32 to vector<8x128xf32>
    %158 = arith.cmpf ogt, %156, %157 : vector<8x128xf32>
    %159 = arith.extui %158 : vector<8x128xi1> to vector<8x128xi32>
    %160 = arith.sitofp %159 : vector<8x128xi32> to vector<8x128xf32>
    %161 = arith.addf %133, %160 : vector<8x128xf32>
    %162 = arith.addf %134, %161 : vector<8x128xf32>
    %163 = arith.index_cast %c5_i32 : i32 to index
    %c0_63 = arith.constant 0 : index
    %c0_64 = arith.constant 0 : index
    %164 = vector.load %arg8[%163, %c0_63, %c0_64] : memref<8x8x128xf32, #tpu.memory_space<vmem>>, vector<1x8x128xf32>
    %165 = vector.shape_cast %164 : vector<1x8x128xf32> to vector<8x128xf32>
    %166 = vector.shape_cast %162 : vector<8x128xf32> to vector<1x8x128xf32>
    tpu.vector_store %arg8[%163, %c0_63, %c0_64], %166 {strides = array<i32>} : memref<8x8x128xf32, #tpu.memory_space<vmem>>, vector<1x8x128xf32>,
    %cst_65 = arith.constant 1.000000e+00 : f32
    %167 = vector.broadcast %cst_65 : f32 to vector<8x128xf32>
    %168 = arith.cmpf oeq, %162, %167 : vector<8x128xf32>
    %169 = arith.extui %168 : vector<8x128xi1> to vector<8x128xi32>
    %170 = arith.sitofp %169 : vector<8x128xi32> to vector<8x128xf32>
    %171 = arith.index_cast %c5_i32 : i32 to index
    %c0_66 = arith.constant 0 : index
    %c0_67 = arith.constant 0 : index
    %172 = vector.load %arg7[%171, %c0_66, %c0_67] : memref<8x8x128xf32, #tpu.memory_space<vmem>>, vector<1x8x128xf32>
    %173 = vector.shape_cast %172 : vector<1x8x128xf32> to vector<8x128xf32>
    %174 = vector.shape_cast %170 : vector<8x128xf32> to vector<1x8x128xf32>
    tpu.vector_store %arg7[%171, %c0_66, %c0_67], %174 {strides = array<i32>} : memref<8x8x128xf32, #tpu.memory_space<vmem>>, vector<1x8x128xf32>,
    %c6_i32 = arith.constant 6 : i32
    %175 = vector.broadcast %3 : vector<1x128xf32> to vector<8x128xf32>
    %176 = arith.mulf %175, %152 : vector<8x128xf32>
    %177 = arith.index_cast %c6_i32 : i32 to index
    %c0_68 = arith.constant 0 : index
    %c0_69 = arith.constant 0 : index
    %178 = vector.load %arg3[%177, %c0_68, %c0_69] : memref<8x8x128xf32, #tpu.memory_space<vmem>>, vector<1x8x128xf32>
    %179 = vector.shape_cast %178 : vector<1x8x128xf32> to vector<8x128xf32>
    %180 = arith.addf %176, %179 : vector<8x128xf32>
    %181 = arith.index_cast %c6_i32 : i32 to index
    %c0_70 = arith.constant 0 : index
    %c0_71 = arith.constant 0 : index
    %182 = vector.load %arg4[%181, %c0_70, %c0_71] : memref<8x8x128xf32, #tpu.memory_space<vmem>>, vector<1x8x128xf32>
    %183 = vector.shape_cast %182 : vector<1x8x128xf32> to vector<8x128xf32>
    %184 = arith.subf %180, %183 : vector<8x128xf32>
    %cst_72 = arith.constant 0.000000e+00 : f32
    %185 = vector.broadcast %cst_72 : f32 to vector<8x128xf32>
    %186 = arith.cmpf ogt, %184, %185 : vector<8x128xf32>
    %187 = arith.extui %186 : vector<8x128xi1> to vector<8x128xi32>
    %188 = arith.sitofp %187 : vector<8x128xi32> to vector<8x128xf32>
    %189 = arith.addf %161, %188 : vector<8x128xf32>
    %190 = arith.addf %162, %189 : vector<8x128xf32>
    %191 = arith.index_cast %c6_i32 : i32 to index
    %c0_73 = arith.constant 0 : index
    %c0_74 = arith.constant 0 : index
    %192 = vector.load %arg8[%191, %c0_73, %c0_74] : memref<8x8x128xf32, #tpu.memory_space<vmem>>, vector<1x8x128xf32>
    %193 = vector.shape_cast %192 : vector<1x8x128xf32> to vector<8x128xf32>
    %194 = vector.shape_cast %190 : vector<8x128xf32> to vector<1x8x128xf32>
    tpu.vector_store %arg8[%191, %c0_73, %c0_74], %194 {strides = array<i32>} : memref<8x8x128xf32, #tpu.memory_space<vmem>>, vector<1x8x128xf32>,
    %cst_75 = arith.constant 1.000000e+00 : f32
    %195 = vector.broadcast %cst_75 : f32 to vector<8x128xf32>
    %196 = arith.cmpf oeq, %190, %195 : vector<8x128xf32>
    %197 = arith.extui %196 : vector<8x128xi1> to vector<8x128xi32>
    %198 = arith.sitofp %197 : vector<8x128xi32> to vector<8x128xf32>
    %199 = arith.index_cast %c6_i32 : i32 to index
    %c0_76 = arith.constant 0 : index
    %c0_77 = arith.constant 0 : index
    %200 = vector.load %arg7[%199, %c0_76, %c0_77] : memref<8x8x128xf32, #tpu.memory_space<vmem>>, vector<1x8x128xf32>
    %201 = vector.shape_cast %200 : vector<1x8x128xf32> to vector<8x128xf32>
    %202 = vector.shape_cast %198 : vector<8x128xf32> to vector<1x8x128xf32>
    tpu.vector_store %arg7[%199, %c0_76, %c0_77], %202 {strides = array<i32>} : memref<8x8x128xf32, #tpu.memory_space<vmem>>, vector<1x8x128xf32>,
    %c7_i32 = arith.constant 7 : i32
    %203 = vector.broadcast %3 : vector<1x128xf32> to vector<8x128xf32>
    %204 = arith.mulf %203, %180 : vector<8x128xf32>
    %205 = arith.index_cast %c7_i32 : i32 to index
    %c0_78 = arith.constant 0 : index
    %c0_79 = arith.constant 0 : index
    %206 = vector.load %arg3[%205, %c0_78, %c0_79] : memref<8x8x128xf32, #tpu.memory_space<vmem>>, vector<1x8x128xf32>
    %207 = vector.shape_cast %206 : vector<1x8x128xf32> to vector<8x128xf32>
    %208 = arith.addf %204, %207 : vector<8x128xf32>
    %209 = arith.index_cast %c7_i32 : i32 to index
    %c0_80 = arith.constant 0 : index
    %c0_81 = arith.constant 0 : index
    %210 = vector.load %arg4[%209, %c0_80, %c0_81] : memref<8x8x128xf32, #tpu.memory_space<vmem>>, vector<1x8x128xf32>
    %211 = vector.shape_cast %210 : vector<1x8x128xf32> to vector<8x128xf32>
    %212 = arith.subf %208, %211 : vector<8x128xf32>
    %cst_82 = arith.constant 0.000000e+00 : f32
    %213 = vector.broadcast %cst_82 : f32 to vector<8x128xf32>
    %214 = arith.cmpf ogt, %212, %213 : vector<8x128xf32>
    %215 = arith.extui %214 : vector<8x128xi1> to vector<8x128xi32>
    %216 = arith.sitofp %215 : vector<8x128xi32> to vector<8x128xf32>
    %217 = arith.addf %189, %216 : vector<8x128xf32>
    %218 = arith.addf %190, %217 : vector<8x128xf32>
    %219 = arith.index_cast %c7_i32 : i32 to index
    %c0_83 = arith.constant 0 : index
    %c0_84 = arith.constant 0 : index
    %220 = vector.load %arg8[%219, %c0_83, %c0_84] : memref<8x8x128xf32, #tpu.memory_space<vmem>>, vector<1x8x128xf32>
    %221 = vector.shape_cast %220 : vector<1x8x128xf32> to vector<8x128xf32>
    %222 = vector.shape_cast %218 : vector<8x128xf32> to vector<1x8x128xf32>
    tpu.vector_store %arg8[%219, %c0_83, %c0_84], %222 {strides = array<i32>} : memref<8x8x128xf32, #tpu.memory_space<vmem>>, vector<1x8x128xf32>,
    %cst_85 = arith.constant 1.000000e+00 : f32
    %223 = vector.broadcast %cst_85 : f32 to vector<8x128xf32>
    %224 = arith.cmpf oeq, %218, %223 : vector<8x128xf32>
    %225 = arith.extui %224 : vector<8x128xi1> to vector<8x128xi32>
    %226 = arith.sitofp %225 : vector<8x128xi32> to vector<8x128xf32>
    %227 = arith.index_cast %c7_i32 : i32 to index
    %c0_86 = arith.constant 0 : index
    %c0_87 = arith.constant 0 : index
    %228 = vector.load %arg7[%227, %c0_86, %c0_87] : memref<8x8x128xf32, #tpu.memory_space<vmem>>, vector<1x8x128xf32>
    %229 = vector.shape_cast %228 : vector<1x8x128xf32> to vector<8x128xf32>
    %230 = vector.shape_cast %226 : vector<8x128xf32> to vector<1x8x128xf32>
    tpu.vector_store %arg7[%227, %c0_86, %c0_87], %230 {strides = array<i32>} : memref<8x8x128xf32, #tpu.memory_space<vmem>>, vector<1x8x128xf32>,
    %c8_i32 = arith.constant 8 : i32
    %c0_88 = arith.constant 0 : index
    %c0_89 = arith.constant 0 : index
    %231 = vector.load %arg10[%c0_88, %c0_89] : memref<8x128xf32, #tpu.memory_space<vmem>>, vector<8x128xf32>
    tpu.vector_store %arg10[%c0_88, %c0_89], %208 {strides = array<i32>} : memref<8x128xf32, #tpu.memory_space<vmem>>, vector<8x128xf32>,
    %c0_90 = arith.constant 0 : index
    %c0_91 = arith.constant 0 : index
    %232 = vector.load %arg11[%c0_90, %c0_91] : memref<8x128xf32, #tpu.memory_space<vmem>>, vector<8x128xf32>
    tpu.vector_store %arg11[%c0_90, %c0_91], %217 {strides = array<i32>} : memref<8x128xf32, #tpu.memory_space<vmem>>, vector<8x128xf32>,
    %c0_92 = arith.constant 0 : index
    %c0_93 = arith.constant 0 : index
    %233 = vector.load %arg12[%c0_92, %c0_93] : memref<8x128xf32, #tpu.memory_space<vmem>>, vector<8x128xf32>
    tpu.vector_store %arg12[%c0_92, %c0_93], %218 {strides = array<i32>} : memref<8x128xf32, #tpu.memory_space<vmem>>, vector<8x128xf32>,
    %c0_94 = arith.constant 0 : index
    %c0_95 = arith.constant 0 : index
    %234 = vector.load %arg9[%c0_94, %c0_95] : memref<8x128xf32, #tpu.memory_space<vmem>>, vector<8x128xf32>
    tpu.vector_store %arg9[%c0_94, %c0_95], %208 {strides = array<i32>} : memref<8x128xf32, #tpu.memory_space<vmem>>, vector<8x128xf32>,
    return
  }
  func.func @transform_0(%arg0: i32, %arg1: i32, %arg2: i32) -> (i32, i32, i32) {
    %c0_i32 = arith.constant 0 : i32
    return %arg2, %arg0, %arg1 : i32, i32, i32
  }
  func.func @transform_1(%arg0: i32, %arg1: i32, %arg2: i32) -> (i32, i32, i32) {
    %c0_i32 = arith.constant 0 : i32
    return %arg2, %arg0, %arg1 : i32, i32, i32
  }
  func.func @transform_2(%arg0: i32, %arg1: i32, %arg2: i32) -> (i32, i32) {
    %c0_i32 = arith.constant 0 : i32
    %c0_i32_0 = arith.constant 0 : i32
    return %c0_i32, %arg1 : i32, i32
  }
  func.func @transform_3(%arg0: i32, %arg1: i32, %arg2: i32) -> (i32, i32) {
    %c0_i32 = arith.constant 0 : i32
    return %arg0, %arg1 : i32, i32
  }
  func.func @transform_4(%arg0: i32, %arg1: i32, %arg2: i32) -> (i32, i32, i32) {
    %c0_i32 = arith.constant 0 : i32
    return %arg2, %arg0, %arg1 : i32, i32, i32
  }
  func.func @transform_5(%arg0: i32, %arg1: i32, %arg2: i32) -> (i32, i32, i32) {
    %c0_i32 = arith.constant 0 : i32
    return %arg2, %arg0, %arg1 : i32, i32, i32
  }
  func.func @transform_6(%arg0: i32, %arg1: i32, %arg2: i32) -> (i32, i32) {
    %c0_i32 = arith.constant 0 : i32
    return %arg0, %arg1 : i32, i32
  }
}

</mosaic_0001>

<bundles_post_ra>
// kernel: tpu_custom_call.1
= control target key start
LH: loop header
LB: loop body
LE: loop exit
PB: predicated region body
PF: predicated region fallthrough
CT: control target
= control target key end

     0   :  { %12 = vsyncpa [#allocation6], 0  ;;  %s587_s0 = inlined_call_operand.hbm [shape: f32[8,2,32], index: 0, kind: input, shape index: {}]   ;;  %s588_s1 = inlined_call_operand.hbm [shape: f32[8,2,32], index: 1, kind: input, shape index: {}]   ;;  %s589_s2 = inlined_call_operand.vmem [shape: f32[1,32], index: 2, kind: input, shape index: {}]   ;;  %s590_s3 = inlined_call_operand.vmem [shape: f32[2,32], index: 3, kind: input, shape index: {}]   ;;  %s591_s4 = inlined_call_operand.hbm [shape: f32[8,2,32], index: 4, kind: output, shape index: {0}]   ;;  %s592_s5 = inlined_call_operand.hbm [shape: f32[8,2,32], index: 5, kind: output, shape index: {1}]   ;;  %s593_s6 = inlined_call_operand.hbm [shape: f32[2,32], index: 6, kind: output, shape index: {2}]  }
   0x1   :  { %13 = vsyncpa [#allocation9], 0 }
   0x2   :  { %14 = vsyncpa [#allocation7], 0 }
   0x3   :  { %15 = vsyncpa [#allocation12], 0 }
   0x4   :  { %20 = vsyncadd [#allocation6], 768  ;;  %s25_s21 = sld [smem:[#allocation0]]   ;;  %s462_s22 = smov [#allocation5]  }
   0x5   :  { %s33_s23 = sshll.u32 %s462_s22, 4  ;;  %s463_s24 = smov 32   ;;  %s34_s23 = int_to_ptr.vmem [resolvable:$true] %s33_s23 }
   0x6   :  { %40 = sst [smem:[#allocation15]] %s463_s24  ;;  %s464_s25 = smov 128  }
   0x7   :  { %42 = sst [smem:[#allocation15 + $0x1]] %s464_s25  ;;  %s465_s26 = smov 1  }
   0x8   :  { %44 = sst [smem:[#allocation15 + $0x2]] %s465_s26  ;;  %s466_s29 = smov 2  }
   0x9   :  { %46 = sst [smem:[#allocation15 + $0x3]] %s463_s24  ;;  %s467_s30 = smov [#allocation6]  }
   0xa   :  { %s377_s27 = sshll.u32 %s25_s21, 26  ;;  %48 = sst [smem:[#allocation15 + $0x4]] %s463_s24 }
   0xb   :  { %s378_s28 = sadd.s32 134217728, %s377_s27  ;;  %50 = sst [smem:[#allocation15 + $0x5]] %s466_s29 }
   0xc   :  { %s468_s7 = smov [#allocation14]  }
   0xd   :  { %52 = dma.general %s587_s0, 256, %s34_s23, %s467_s30, %s468_s7, [#allocation15], %s378_s28, 0  }
   0xe   :  { %57 = vsyncadd [#allocation9], 768  ;;  %s62_s10 = sld [smem:[#allocation0]]   ;;  %s469_s11 = smov [#allocation8]  }
   0xf   :  { %s70_s12 = sshll.u32 %s469_s11, 4  ;;  %s470_s13 = smov 32   ;;  %s71_s12 = int_to_ptr.vmem [resolvable:$true] %s70_s12 }
  0x10   :  { %77 = sst [smem:[#allocation17]] %s470_s13  ;;  %s471_s14 = smov 128  }
  0x11   :  { %79 = sst [smem:[#allocation17 + $0x1]] %s471_s14  ;;  %s472_s15 = smov 1  }
  0x12   :  { %81 = sst [smem:[#allocation17 + $0x2]] %s472_s15  ;;  %s473_s18 = smov 2  }
  0x13   :  { %83 = sst [smem:[#allocation17 + $0x3]] %s470_s13  ;;  %s474_s19 = smov [#allocation9]  }
  0x14   :  { %s379_s16 = sshll.u32 %s62_s10, 26  ;;  %85 = sst [smem:[#allocation17 + $0x4]] %s470_s13 }
  0x15   :  { %s380_s17 = sadd.s32 134217728, %s379_s16  ;;  %87 = sst [smem:[#allocation17 + $0x5]] %s473_s18 }
  0x16   :  { %s475_s20 = smov [#allocation16]  }
  0x17   :  { %89 = dma.general %s588_s1, 256, %s71_s12, %s474_s19, %s475_s20, [#allocation17], %s380_s17, 0  }
  0x18   :  { %454 = dma.done.wait [#allocation6], 1024  }
  0x19   :  { %455 = vsyncadd [#allocation6], 4294966272 }
  0x1a   :  { %456 = dma.done.wait [#allocation9], 1024  }
  0x1b   :  { %457 = vsyncadd [#allocation9], 4294966272  ;;  %v104_v0 = vld [vmem:[%s590_s3] sm:$0xff]  ;;  %v135_v6 = vld [vmem:[#allocation5 + $0x8] sm:$0xff]  ;;  %v476_v11 = vmov 0.0  }
  0x1c   :  { %v543_v1 = vld [vmem:[%s589_s2] ss:$0 sm:$0xff]  ;;  %v138_v9 = vld [vmem:[#allocation8 + $0x8] sm:$0xff]  ;;  %v154_v13 = vld [vmem:[#allocation5 + $0x10] sm:$0xff] }
  0x1d   :  { %v119_v2 = vld [vmem:[#allocation5] sm:$0xff]  ;;  %v118_v3 = vmul.f32 %v543_v1, %v104_v0  ;;  %v157_v17 = vld [vmem:[#allocation8 + $0x10] sm:$0xff]  ;;  %v173_v20 = vld [vmem:[#allocation5 + $0x18] sm:$0xff] }
  0x1e   :  { %v121_v4 = vld [vmem:[#allocation8] sm:$0xff]  ;;  %v176_v24 = vld [vmem:[#allocation8 + $0x18] sm:$0xff]  ;;  %v211_v37 = vld [vmem:[#allocation5 + $0x28] sm:$0xff] }
  0x1f   :  { %v120_v5 = vadd.f32 %v119_v2, %v118_v3  ;;  %v192_v28 = vld [vmem:[#allocation5 + $0x20] sm:$0xff]  ;;  %v214_v42 = vld [vmem:[#allocation8 + $0x28] sm:$0xff]  ;;  %v230_v46 = vld [vmem:[#allocation5 + $0x30] sm:$0xff] }
  0x20   :  { %v195_v33 = vld [vmem:[#allocation8 + $0x20] sm:$0xff]  ;;  %v233_v51 = vld [vmem:[#allocation8 + $0x30] sm:$0xff]  ;;  %v249_v55 = vld [vmem:[#allocation5 + $0x38] sm:$0xff] }
  0x21   :  { %v122_v7 = vsub.f32 %v120_v5, %v121_v4  ;;  %v133_v8 = vmul.f32 %v543_v1, %v120_v5  ;;  %v252_v60 = vld [vmem:[#allocation8 + $0x38] sm:$0xff] }
  0x23   :  { %vm123_vm0 = vcmp.gt.f32.partialorder %v122_v7, 0.0  ;;  %v136_v10 = vadd.f32 %v135_v6, %v133_v8 }
  0x24   :  { %v382_v12 = vsel %vm123_vm0, 1.0, %v476_v11 }
  0x25   :  { %128 = vst [vmem:[#allocation11] sm:$0xff] %v382_v12  ;;  %vm129_vm1 = vcmp.eq.f32.partialorder %v382_v12, 1.0  ;;  %v139_v14 = vsub.f32 %v136_v10, %v138_v9  ;;  %v152_v15 = vmul.f32 %v543_v1, %v136_v10 }
  0x26   :  { %v383_v16 = vsel %vm129_vm1, 1.0, %v476_v11 }
  0x27   :  { %132 = vst [vmem:[#allocation10] sm:$0xff] %v383_v16  ;;  %vm140_vm2 = vcmp.gt.f32.partialorder %v139_v14, 0.0  ;;  %v155_v18 = vadd.f32 %v154_v13, %v152_v15 }
  0x28   :  { %v384_v19 = vsel %vm140_vm2, 1.0, %v476_v11 }
  0x29   :  { %v143_v21 = vadd.f32 %v384_v19, %v382_v12  ;;  %v158_v22 = vsub.f32 %v155_v18, %v157_v17  ;;  %v171_v23 = vmul.f32 %v543_v1, %v155_v18 }
  0x2b   :  { %v144_v25 = vadd.f32 %v382_v12, %v143_v21  ;;  %vm159_vm3 = vcmp.gt.f32.partialorder %v158_v22, 0.0  ;;  %v174_v26 = vadd.f32 %v173_v20, %v171_v23 }
  0x2c   :  { %v386_v27 = vsel %vm159_vm3, 1.0, %v476_v11 }
  0x2d   :  { %146 = vst [vmem:[#allocation11 + $0x8] sm:$0xff] %v144_v25  ;;  %vm147_vm4 = vcmp.eq.f32.partialorder %v144_v25, 1.0  ;;  %v162_v29 = vadd.f32 %v386_v27, %v143_v21  ;;  %v177_v30 = vsub.f32 %v174_v26, %v176_v24  ;;  %v190_v31 = vmul.f32 %v543_v1, %v174_v26 }
  0x2e   :  { %v385_v32 = vsel %vm147_vm4, 1.0, %v476_v11 }
  0x2f   :  { %151 = vst [vmem:[#allocation10 + $0x8] sm:$0xff] %v385_v32  ;;  %v163_v34 = vadd.f32 %v162_v29, %v144_v25  ;;  %vm178_vm5 = vcmp.gt.f32.partialorder %v177_v30, 0.0  ;;  %v193_v35 = vadd.f32 %v192_v28, %v190_v31 }
  0x30   :  { %v388_v36 = vsel %vm178_vm5, 1.0, %v476_v11 }
  0x31   :  { %165 = vst [vmem:[#allocation11 + $0x10] sm:$0xff] %v163_v34  ;;  %vm166_vm6 = vcmp.eq.f32.partialorder %v163_v34, 1.0  ;;  %v181_v38 = vadd.f32 %v388_v36, %v162_v29  ;;  %v196_v39 = vsub.f32 %v193_v35, %v195_v33  ;;  %v209_v40 = vmul.f32 %v543_v1, %v193_v35 }
  0x32   :  { %v387_v41 = vsel %vm166_vm6, 1.0, %v476_v11 }
  0x33   :  { %170 = vst [vmem:[#allocation10 + $0x10] sm:$0xff] %v387_v41  ;;  %v182_v43 = vadd.f32 %v181_v38, %v163_v34  ;;  %vm197_vm7 = vcmp.gt.f32.partialorder %v196_v39, 0.0  ;;  %v212_v44 = vadd.f32 %v211_v37, %v209_v40 }
  0x34   :  { %v390_v45 = vsel %vm197_vm7, 1.0, %v476_v11 }
  0x35   :  { %184 = vst [vmem:[#allocation11 + $0x18] sm:$0xff] %v182_v43  ;;  %vm185_vm8 = vcmp.eq.f32.partialorder %v182_v43, 1.0  ;;  %v200_v47 = vadd.f32 %v390_v45, %v181_v38  ;;  %v215_v48 = vsub.f32 %v212_v44, %v214_v42  ;;  %v228_v49 = vmul.f32 %v543_v1, %v212_v44 }
  0x36   :  { %v389_v50 = vsel %vm185_vm8, 1.0, %v476_v11 }
  0x37   :  { %189 = vst [vmem:[#allocation10 + $0x18] sm:$0xff] %v389_v50  ;;  %v201_v52 = vadd.f32 %v200_v47, %v182_v43  ;;  %vm216_vm9 = vcmp.gt.f32.partialorder %v215_v48, 0.0  ;;  %v231_v53 = vadd.f32 %v230_v46, %v228_v49 }
  0x38   :  { %v392_v54 = vsel %vm216_vm9, 1.0, %v476_v11 }
  0x39   :  { %203 = vst [vmem:[#allocation11 + $0x20] sm:$0xff] %v201_v52  ;;  %vm204_vm10 = vcmp.eq.f32.partialorder %v201_v52, 1.0  ;;  %v219_v56 = vadd.f32 %v392_v54, %v200_v47  ;;  %v234_v57 = vsub.f32 %v231_v53, %v233_v51  ;;  %v247_v58 = vmul.f32 %v543_v1, %v231_v53 }
  0x3a   :  { %v391_v59 = vsel %vm204_vm10, 1.0, %v476_v11 }
  0x3b   :  { %208 = vst [vmem:[#allocation10 + $0x20] sm:$0xff] %v391_v59  ;;  %v220_v61 = vadd.f32 %v219_v56, %v201_v52  ;;  %vm235_vm11 = vcmp.gt.f32.partialorder %v234_v57, 0.0  ;;  %v250_v62 = vadd.f32 %v249_v55, %v247_v58 }
  0x3c   :  { %v394_v63 = vsel %vm235_vm11, 1.0, %v476_v11 }
  0x3d   :  { %222 = vst [vmem:[#allocation11 + $0x28] sm:$0xff] %v220_v61  ;;  %vm223_vm12 = vcmp.eq.f32.partialorder %v220_v61, 1.0  ;;  %v238_v0 = vadd.f32 %v394_v63, %v219_v56  ;;  %v253_v2 = vsub.f32 %v250_v62, %v252_v60  ;;  %269 = vst [vmem:[#allocation13] sm:$0xff] %v250_v62 }
  0x3e   :  { %v393_v3 = vsel %vm223_vm12, 1.0, %v476_v11 }
  0x3f   :  { %227 = vst [vmem:[#allocation10 + $0x28] sm:$0xff] %v393_v3  ;;  %v239_v4 = vadd.f32 %v238_v0, %v220_v61  ;;  %vm254_vm13 = vcmp.gt.f32.partialorder %v253_v2, 0.0 }
  0x40   :  { %v396_v1 = vsel %vm254_vm13, 1.0, %v476_v11 }
  0x41   :  { %241 = vst [vmem:[#allocation11 + $0x30] sm:$0xff] %v239_v4  ;;  %vm242_vm14 = vcmp.eq.f32.partialorder %v239_v4, 1.0  ;;  %v257_v5 = vadd.f32 %v396_v1, %v238_v0 }
  0x42   :  { %v395_v6 = vsel %vm242_vm14, 1.0, %v476_v11 }
  0x43   :  { %246 = vst [vmem:[#allocation10 + $0x30] sm:$0xff] %v395_v6  ;;  %v258_v7 = vadd.f32 %v257_v5, %v239_v4 }
  0x45   :  { %260 = vst [vmem:[#allocation11 + $0x38] sm:$0xff] %v258_v7  ;;  %vm261_vm15 = vcmp.eq.f32.partialorder %v258_v7, 1.0 }
  0x46   :  { %v397_v8 = vsel %vm261_vm15, 1.0, %v476_v11 }
  0x47   :  { %265 = vst [vmem:[#allocation10 + $0x38] sm:$0xff] %v397_v8 }
  0x48   :  { %274 = vsyncadd [#allocation7], 768  ;;  %s477_s1 = smov [#allocation10]   ;;  %s478_s3 = smov 128  }
  0x49   :  { %s291_s2 = sshll.u32 %s477_s1, 4  ;;  %298 = sst [smem:[#allocation19]] %s478_s3  ;;  %s292_s2 = int_to_ptr.vmem [resolvable:$true] %s291_s2 }
  0x4a   :  { %s479_s26 = smov 32   ;;  %s480_s27 = smov 1  }
  0x4b   :  { %300 = sst [smem:[#allocation19 + $0x1]] %s479_s26  ;;  %s481_s28 = smov 2  }
  0x4c   :  { %302 = sst [smem:[#allocation19 + $0x2]] %s480_s27  ;;  %s482_s29 = smov [#allocation7]  }
  0x4d   :  { %304 = sst [smem:[#allocation19 + $0x3]] %s479_s26  ;;  %s483_s30 = smov [#allocation18]  }
  0x4e   :  { %306 = sst [smem:[#allocation19 + $0x4]] %s479_s26  ;;  %s484_s7 = smov 0  }
  0x4f   :  { %308 = sst [smem:[#allocation19 + $0x5]] %s481_s28 }
  0x50   :  { %310 = dma.general %s292_s2, 256, %s591_s4, %s482_s29, %s483_s30, [#allocation19], %s484_s7, 0  }
  0x51   :  { %315 = vsyncadd [#allocation12], 768  ;;  %s485_s10 = smov [#allocation11]   ;;  %s486_s12 = smov 128  }
  0x52   :  { %s332_s11 = sshll.u32 %s485_s10, 4  ;;  %339 = sst [smem:[#allocation21]] %s486_s12  ;;  %s333_s11 = int_to_ptr.vmem [resolvable:$true] %s332_s11 }
  0x53   :  { %s487_s13 = smov 32   ;;  %s488_s14 = smov 1  }
  0x54   :  { %341 = sst [smem:[#allocation21 + $0x1]] %s487_s13  ;;  %s489_s15 = smov 2  }
  0x55   :  { %343 = sst [smem:[#allocation21 + $0x2]] %s488_s14  ;;  %s490_s16 = smov [#allocation12]  }
  0x56   :  { %345 = sst [smem:[#allocation21 + $0x3]] %s487_s13  ;;  %s491_s17 = smov [#allocation20]  }
  0x57   :  { %347 = sst [smem:[#allocation21 + $0x4]] %s487_s13  ;;  %s492_s18 = smov 0  }
  0x58   :  { %349 = sst [smem:[#allocation21 + $0x5]] %s489_s15 }
  0x59   :  { %351 = dma.general %s333_s11, 256, %s592_s5, %s490_s16, %s491_s17, [#allocation21], %s492_s18, 0  }
  0x5a   :  { %356 = vsyncadd [#allocation12], 96  ;;  %s493_s4 = smov [#allocation13]  }
  0x5b   :  { %s357_s0 = sshll.u32 %s493_s4, 4  ;;  %s358_s0 = int_to_ptr.vmem [resolvable:$true] %s357_s0 }
  0x5c   :  { %s432_s21 = scalar_lea.vmem %s358_s0, 32  ;;  %s436_s22 = scalar_lea.vmem %s358_s0, 128 }
  0x5d   :  { %p433_p0 = scmp.ne.s32.totalorder %s358_s0, %s432_s21  ;;  %p437_p1 = scmp.lt.s32.totalorder %s358_s0, %s358_s0 }
  0x5e   :  { %p438_p2 = scmp.lt.s32.totalorder %s436_s22, %s432_s21 }
  0x60   :  { %p439_p3 = por %p438_p2, %p437_p1 }
  0x62   :  { %p440_p4 = pnand %p439_p3, %p433_p0 }
  0x64   :  { %443 = shalt.err (!%p440_p4)
}
  0x65   :  { %s444_s25 = scalar_lea.hbm %s593_s6, 32 }
  0x66   :  { %p445_p5 = scmp.ne.s32.totalorder %s593_s6, %s444_s25  ;;  %p448_p6 = scmp.lt.u32.totalorder %s444_s25, %s593_s6 }
  0x68   :  { %p450_p7 = pnand %p448_p6, %p445_p5 }
  0x6a   :  { %453 = shalt.err (!%p450_p7)
}
  0x6b   :  { %s494_s26 = smov 32   ;;  %s495_s27 = smov 2  }
  0x6c   :  { %363 = dma.vmem_to_hbm [thread:$0]  %s358_s0, 32, %s593_s6, [#allocation12], %s494_s26, %s494_s26, %s495_s27  }
  0x6d   :  { %458 = dma.done.wait [#allocation7], 1024  }
  0x6e   :  { %459 = vsyncadd [#allocation7], 4294966272 }
  0x6f   :  { %460 = dma.done.wait [#allocation12], 1152  }
  0x70   :  { %461 = vsyncadd [#allocation12], 4294966144 }
  0x71   :  { %373 = vsyncpa [#allocation6], 1 }
  0x72   :  { %374 = vsyncpa [#allocation9], 1 }
  0x73   :  { %375 = vsyncpa [#allocation7], 1 }
  0x74   :  { %376 = vsyncpa [#allocation12], 1 }

</bundles_post_ra>
